<compile_context>
chip_gen: v6e
topology: v6e:2x2x1
jax: 0.10.0
libtpu: 0.0.40
codegen_flags: <defaults>
</compile_context>

<pallas_src>
import math
from functools import partial

import jax
import jax.numpy as jnp
from jax import lax
from jax.experimental import pallas as pl
from jax.experimental.pallas import tpu as pltpu


# ----------------------------------------------------------------------------- helpers


def _round_up(x, n):
    return ((x + n - 1) // n) * n


def _pad_to(a, shape):
    """Zero-pad `a` up to `shape`; returns `a` unchanged when already that shape."""
    pads = [(0, t - s) for s, t in zip(a.shape, shape)]
    if all(p == 0 for _, p in pads):
        return a
    return jnp.pad(a, pads)


def _gelu_exact_f32(x):
    # PyTorch nn.GELU() default: exact erf-based GELU (f32 math).
    return 0.5 * x * (1.0 + lax.erf(x * (1.0 / math.sqrt(2.0))))


def _gelu_tanh_f32(x):
    # tanh approximation (routes through the otherwise-idle EUP slot). Opt-in only —
    # it changes numerics vs the nn.GELU() default.
    c = math.sqrt(2.0 / math.pi)
    return 0.5 * x * (1.0 + jnp.tanh(c * (x + 0.044715 * x * x * x)))


def _device_info():
    """(vmem_capacity_bytes, has_two_tensorcores_per_chip)."""
    try:
        cap = int(pltpu.get_tpu_info().vmem_capacity_bytes)
    except Exception:
        cap = 64 * 1024 * 1024          # conservative fallback (v7x per-TC size)
    try:
        kind = jax.devices()[0].device_kind.lower()
    except Exception:
        kind = ""
    multi_tc = ("v7" in kind) or ("7x" in kind)
    return cap, multi_tc


def _largest_aligned_divisor(total, target, align=128):
    """Largest multiple of `align` dividing `total` and <= max(target, align).

    `total` must be a positive multiple of `align`.
    """
    cand = max(align, min(total, (target // align) * align))
    while cand > align and total % cand != 0:
        cand -= align
    return cand


def _pick_tm_sub(tm):
    """Largest sub-block size <= 128 (multiple of 16) dividing tm."""
    if tm <= 128:
        return tm
    for cand in range(128, 0, -16):
        if tm % cand == 0:
            return cand
    return tm


def _select_tiles(m, d_in_p, d_hid_p, d_out_p, x_bytes, w_bytes, budget, multi_tc):
    """Pick (tm, tk, tn) from the per-generation VMEM budget."""
    m16 = _round_up(m, 16)

    # Row tile: weights are re-streamed from HBM once per row tile, so a big tm keeps
    # the kernel compute-bound (v6e crossover ~700 flop/byte -> tm ~ 1024 in bf16).
    tm_target = 1024 if w_bytes <= 2 else 512
    tm = min(m16, tm_target)
    # v7x megacore: make sure the "parallel" row axis has >= 2 tiles when possible.
    if multi_tc and m16 <= tm and m16 >= 256:
        tm = _round_up((m16 + 1) // 2, 16)

    tk = _largest_aligned_divisor(d_hid_p, 1024)   # big tk -> fewer acc RMW passes
    tn = d_out_p                                   # only tile d_out if VMEM demands it

    def vmem_est(tm_, tk_, tn_):
        return (2 * tm_ * d_in_p * x_bytes         # x block (double-buffered)
                + 2 * d_in_p * tk_ * w_bytes       # W1 slice
                + 2 * tk_ * tn_ * w_bytes          # W2 tile
                + 2 * (tk_ + tn_) * w_bytes        # bias slices
                + 2 * tm_ * tn_ * x_bytes          # output block
                + tm_ * tn_ * 4                    # f32 accumulator scratch
                + (2 << 20))                       # compiler scratch / spill slack

    # Greedy shrink until the working set fits: tk first, then tile d_out, then tm.
    # Second pass relaxes the soft floors for extreme shapes.
    for tk_floor, tn_floor, tm_floor in ((256, 512, 256), (128, 128, 16)):
        while vmem_est(tm, tk, tn) > budget:
            if tk > tk_floor:
                tk = _largest_aligned_divisor(d_hid_p, max(tk_floor, tk // 2))
            elif tn > tn_floor:
                tn = _largest_aligned_divisor(d_out_p, max(tn_floor, tn // 2))
            elif tm > tm_floor:
                tm = max(tm_floor, _round_up(tm // 2, 16))
            else:
                break
    return tm, tk, tn, vmem_est(tm, tk, tn)


# ----------------------------------------------------------------------------- kernel


def mlp_kernel(x_ref, w1_ref, b1_ref, w2_ref, b2_ref, o_ref, acc_ref, *,
               tm_sub, n_sub, approximate_gelu, precision):
    k = pl.program_id(2)

    @pl.when(k == 0)
    def _():
        acc_ref[...] = jnp.zeros_like(acc_ref)

    b1f = b1_ref[...].astype(jnp.float32)            # (1, tk) — hoisted broadcast
    gelu = _gelu_tanh_f32 if approximate_gelu else _gelu_exact_f32

    def sub_block(row):
        # fc1 slice: (tm_sub, d_in) @ (d_in, tk) on the MXU, f32 accumulation + epilogue.
        h = jnp.dot(x_ref[pl.ds(row, tm_sub), :], w1_ref[...],
                    preferred_element_type=jnp.float32, precision=precision)
        h = gelu(h + b1f)
        # fc2 partial sum over this hidden slice into the f32 VMEM accumulator.
        acc_ref[pl.ds(row, tm_sub), :] += jnp.dot(
            h.astype(w2_ref.dtype), w2_ref[...],
            preferred_element_type=jnp.float32, precision=precision)

    if n_sub == 1:
        sub_block(0)
    else:
        # Sub-chunk rows so fc1 MXU, GELU (VPU/EUP) and fc2 MXU overlap across
        # sub-blocks instead of serializing behind a full (tm, tk) f32 hidden block.
        def body(s, carry):
            sub_block(pl.multiple_of(s * tm_sub, tm_sub))
            return carry
        lax.fori_loop(0, n_sub, body, 0, unroll=True)

    @pl.when(k == pl.num_programs(2) - 1)
    def _():
        o_ref[...] = (acc_ref[...] + b2_ref[...].astype(jnp.float32)).astype(o_ref.dtype)


# ----------------------------------------------------------------------------- wrapper


def pad_mlp_params(w1, b1, w2, b2):
    """Zero-pad parameters to 128-aligned feature dims ONCE, outside the hot path.

    Pass the result to mlp_pallas together with out_features=<original out dim>.
    """
    d_in, d_hid = w1.shape
    d_out = w2.shape[1]
    d_in_p, d_hid_p, d_out_p = (_round_up(d, 128) for d in (d_in, d_hid, d_out))
    return (_pad_to(w1, (d_in_p, d_hid_p)),
            _pad_to(b1, (d_hid_p,)),
            _pad_to(w2, (d_hid_p, d_out_p)),
            _pad_to(b2, (d_out_p,)))


def mlp_pallas(x, w1, b1, w2, b2, *, out_features=None, approximate_gelu=False,
               precision=None, mxu_bf16_operands=False):
    """Fused MLP forward: GELU(x @ W1 + b1) @ W2 + b2 (dropout p=0 is identity).

    x: (..., in_features) -> (..., out_features). Weights stored as (in, out); they may
    be pre-padded with pad_mlp_params (pass out_features in that case).
    """
    orig_shape = x.shape
    if out_features is None:
        out_features = w2.shape[1]
    out_dtype = x.dtype

    if mxu_bf16_operands and x.dtype == jnp.float32:
        # bf16 MXU operands with f32 accumulation (useful on v5e's bf16-native MXU).
        x, w1, b1, w2, b2 = (t.astype(jnp.bfloat16) for t in (x, w1, b1, w2, b2))

    xm = x.reshape(-1, x.shape[-1])
    m = xm.shape[0]
    d_hid = w1.shape[1]
    assert w2.shape[0] == d_hid, "w1 / w2 hidden dims must match"
    assert xm.shape[1] <= w1.shape[0], "x feature dim larger than w1 rows"

    # Lane-dense (128-aligned) feature dims; padding skipped when already aligned.
    d_in_p = _round_up(w1.shape[0], 128)
    d_hid_p = _round_up(d_hid, 128)
    d_out_p = _round_up(w2.shape[1], 128)

    x_bytes = jnp.dtype(x.dtype).itemsize
    w_bytes = jnp.dtype(w1.dtype).itemsize

    # Per-generation VMEM budget (v5e/v6e: ~96 MiB, v7x: ~48 MiB per TC).
    vmem_cap, multi_tc = _device_info()
    budget = max(24 * 1024 * 1024, (vmem_cap * 3) // 4)

    tm, tk, tn, vmem_est = _select_tiles(m, d_in_p, d_hid_p, d_out_p,
                                         x_bytes, w_bytes, budget, multi_tc)
    tm_sub = _pick_tm_sub(tm)
    n_sub = tm // tm_sub

    m_p = _round_up(m, tm)

    xm_p = _pad_to(xm, (m_p, d_in_p))
    w1_p = _pad_to(w1, (d_in_p, d_hid_p))
    b1_p = _pad_to(b1, (d_hid_p,)).reshape(1, d_hid_p)
    w2_p = _pad_to(w2, (d_hid_p, d_out_p))
    b2_p = _pad_to(b2, (d_out_p,)).reshape(1, d_out_p)

    grid = (m_p // tm, d_out_p // tn, d_hid_p // tk)
    n_i, n_j, _ = grid

    out_bytes = jnp.dtype(out_dtype).itemsize
    cost = pl.CostEstimate(
        flops=2 * m_p * (d_in_p * d_hid_p + d_hid_p * d_out_p),
        transcendentals=m_p * d_hid_p,
        bytes_accessed=int(
            m_p * d_in_p * x_bytes                         # x (block reused over j, k)
            + m_p * d_out_p * out_bytes                    # output write
            + n_i * n_j * d_in_p * d_hid_p * w_bytes       # W1 re-streamed per (i, j)
            + n_i * d_hid_p * d_out_p * w_bytes            # W2 re-streamed per i
            + n_i * n_j * (d_hid_p + d_out_p) * w_bytes),  # biases
    )

    vmem_limit = int(min(vmem_cap, max(budget, vmem_est)))

    out_p = pl.pallas_call(
        partial(mlp_kernel, tm_sub=tm_sub, n_sub=n_sub,
                approximate_gelu=approximate_gelu, precision=precision),
        out_shape=jax.ShapeDtypeStruct((m_p, d_out_p), out_dtype),
        grid_spec=pltpu.PrefetchScalarGridSpec(
            num_scalar_prefetch=0,
            grid=grid,
            in_specs=[
                pl.BlockSpec((tm, d_in_p), lambda i, j, k: (i, 0)),   # x row tile
                pl.BlockSpec((d_in_p, tk), lambda i, j, k: (0, k)),   # W1 hidden slice
                pl.BlockSpec((1, tk), lambda i, j, k: (0, k)),        # b1 slice
                pl.BlockSpec((tk, tn), lambda i, j, k: (k, j)),       # W2 (hid, out) tile
                pl.BlockSpec((1, tn), lambda i, j, k: (0, j)),        # b2 slice
            ],
            out_specs=pl.BlockSpec((tm, tn), lambda i, j, k: (i, j)),
            scratch_shapes=[pltpu.VMEM((tm, tn), jnp.float32)],
        ),
        compiler_params=pltpu.CompilerParams(
            dimension_semantics=("parallel", "parallel", "arbitrary"),
            vmem_limit_bytes=vmem_limit,
        ),
        cost_estimate=cost,
    )(xm_p, w1_p, b1_p, w2_p, b2_p)

    out = out_p[:m, :out_features]
    return out.reshape(*orig_shape[:-1], out_features)


# ----------------------------------------------------------------------------- reference / demo


def init_mlp_params(key, in_features, hidden_features, out_features, dtype=jnp.float32):
    # Deterministic init mirroring nn.Linear's uniform(-1/sqrt(fan_in), 1/sqrt(fan_in)).
    k1, k2, k3, k4 = jax.random.split(key, 4)
    lim1 = 1.0 / math.sqrt(in_features)
    lim2 = 1.0 / math.sqrt(hidden_features)
    w1 = jax.random.uniform(k1, (in_features, hidden_features), dtype, -lim1, lim1)
    b1 = jax.random.uniform(k2, (hidden_features,), dtype, -lim1, lim1)
    w2 = jax.random.uniform(k3, (hidden_features, out_features), dtype, -lim2, lim2)
    b2 = jax.random.uniform(k4, (out_features,), dtype, -lim2, lim2)
    return w1, b1, w2, b2


def _ref_mlp(x, w1, b1, w2, b2):
    h = x @ w1 + b1
    h = 0.5 * h * (1.0 + lax.erf(h / math.sqrt(2.0)))
    return h @ w2 + b2


if __name__ == "__main__":
    # Small shapes consistent with a transformer-block MLP: batch=2, seq=8.
    B, S = 2, 8
    in_features, hidden_features, out_features = 32, 64, 32

    key = jax.random.PRNGKey(0)
    kx, kp = jax.random.split(key)
    x = jax.random.normal(kx, (B, S, in_features), jnp.float32)
    w1, b1, w2, b2 = init_mlp_params(kp, in_features, hidden_features, out_features)

    # Pre-pad params once outside the hot path (padding is skipped on later calls).
    w1p, b1p, w2p, b2p = pad_mlp_params(w1, b1, w2, b2)

    # f32 path (pre-padded params).
    y = jax.block_until_ready(
        mlp_pallas(x, w1p, b1p, w2p, b2p, out_features=out_features))
    y_ref = _ref_mlp(x, w1, b1, w2, b2)
    assert y.shape == (B, S, out_features)
    assert jnp.allclose(y, y_ref, atol=1e-5, rtol=1e-5)

    # Ragged token count: exercises the M-padding path (no divisibility requirement).
    x_r = jax.random.normal(kx, (1, 5, in_features), jnp.float32)
    y_r = jax.block_until_ready(
        mlp_pallas(x_r, w1p, b1p, w2p, b2p, out_features=out_features))
    assert jnp.allclose(y_r, _ref_mlp(x_r, w1, b1, w2, b2), atol=1e-5, rtol=1e-5)

    # bf16 operands (un-padded weights -> internal padding path), f32 accumulation.
    xb = x.astype(jnp.bfloat16)
    w1b, b1b, w2b, b2b = (t.astype(jnp.bfloat16) for t in (w1, b1, w2, b2))
    yb = jax.block_until_ready(mlp_pallas(xb, w1b, b1b, w2b, b2b))
    yb_ref = _ref_mlp(xb.astype(jnp.float32), w1b.astype(jnp.float32),
                      b1b.astype(jnp.float32), w2b.astype(jnp.float32),
                      b2b.astype(jnp.float32))
    assert yb.shape == (B, S, out_features)
    assert jnp.allclose(yb.astype(jnp.float32), yb_ref, atol=5e-2, rtol=5e-2)

    # Medium shape: exercises the multi-step hidden reduction (grid k > 1) and the
    # sub-chunked kernel body (n_sub > 1).
    in_m, hid_m, out_m = 256, 2048, 256
    km1, km2 = jax.random.split(kp)
    xm_ = jax.random.normal(km1, (2, 128, in_m), jnp.float32)
    wm1, bm1, wm2, bm2 = init_mlp_params(km2, in_m, hid_m, out_m)
    ym = jax.block_until_ready(mlp_pallas(xm_, wm1, bm1, wm2, bm2))
    ym_ref = _ref_mlp(xm_, wm1, bm1, wm2, bm2)
    assert ym.shape == (2, 128, out_m)
    assert jnp.allclose(ym, ym_ref, atol=5e-3, rtol=5e-3)

    print("KERNEL_OK")
</pallas_src>

<mosaic_0001>
module attributes {stable_mosaic.version = 11 : i64} {
  func.func @mlp_kernel(%arg0: i32, %arg1: i32, %arg2: i32, %arg3: memref<16x128xf32, #tpu.memory_space<vmem>>, %arg4: memref<128x128xf32, #tpu.memory_space<vmem>>, %arg5: memref<1x128xf32, #tpu.memory_space<vmem>>, %arg6: memref<128x128xf32, #tpu.memory_space<vmem>>, %arg7: memref<1x128xf32, #tpu.memory_space<vmem>>, %arg8: memref<16x128xf32, #tpu.memory_space<vmem>>, %arg9: memref<16x128xf32, #tpu.memory_space<vmem>>) attributes {dimension_semantics = [#tpu.dimension_semantics<parallel>, #tpu.dimension_semantics<parallel>, #tpu.dimension_semantics<arbitrary>], iteration_bounds = array<i64: 1, 1, 1>, scalar_prefetch = 0 : i64, scratch_operands = 1 : i64, tpu.core_type = #tpu.core_type<tc>, window_params = [{transform_indices = @transform_0, window_bounds = array<i64: 16, 128>}, {transform_indices = @transform_1, window_bounds = array<i64: 128, 128>}, {transform_indices = @transform_2, window_bounds = array<i64: 1, 128>}, {transform_indices = @transform_3, window_bounds = array<i64: 128, 128>}, {transform_indices = @transform_4, window_bounds = array<i64: 1, 128>}, {transform_indices = @transform_5, window_bounds = array<i64: 16, 128>}]} {
    %c0_i32 = arith.constant 0 : i32
    %0 = arith.cmpi eq, %arg2, %c0_i32 : i32
    %1 = arith.extui %0 : i1 to i32
    %c0_i32_0 = arith.constant 0 : i32
    %2 = arith.cmpi ne, %1, %c0_i32_0 : i32
    scf.if %2 {
      %cst_18 = arith.constant 0.000000e+00 : f32
      %25 = vector.broadcast %cst_18 : f32 to vector<16x128xf32>
      %c0_19 = arith.constant 0 : index
      %c0_20 = arith.constant 0 : index
      %26 = vector.load %arg9[%c0_19, %c0_20] : memref<16x128xf32, #tpu.memory_space<vmem>>, vector<16x128xf32>
      tpu.vector_store %arg9[%c0_19, %c0_20], %25 {strides = array<i32>} : memref<16x128xf32, #tpu.memory_space<vmem>>, vector<16x128xf32>,
    } else {
    }
    %c0 = arith.constant 0 : index
    %c0_1 = arith.constant 0 : index
    %3 = vector.load %arg5[%c0, %c0_1] : memref<1x128xf32, #tpu.memory_space<vmem>>, vector<1x128xf32>
    %c0_2 = arith.constant 0 : index
    %c0_3 = arith.constant 0 : index
    %4 = vector.load %arg3[%c0_2, %c0_3] : memref<16x128xf32, #tpu.memory_space<vmem>>, vector<16x128xf32>
    %c0_4 = arith.constant 0 : index
    %c0_5 = arith.constant 0 : index
    %5 = vector.load %arg4[%c0_4, %c0_5] : memref<128x128xf32, #tpu.memory_space<vmem>>, vector<128x128xf32>
    %cst = arith.constant dense<0.000000e+00> : vector<16x128xf32>
    %6 = tpu.matmul %4, %5, %cst {dimension_numbers = #tpu.dot_dimension_numbers<[1], [0], [0], [1], [0, 0, 1, 1], [], []>} : vector<16x128xf32>, vector<128x128xf32>, vector<16x128xf32> -> vector<16x128xf32>
    %7 = vector.broadcast %3 : vector<1x128xf32> to vector<16x128xf32>
    %8 = arith.addf %6, %7 : vector<16x128xf32>
    %cst_6 = arith.constant 5.000000e-01 : f32
    %9 = vector.broadcast %cst_6 : f32 to vector<16x128xf32>
    %10 = arith.mulf %9, %8 : vector<16x128xf32>
    %cst_7 = arith.constant 0.707106769 : f32
    %11 = vector.broadcast %cst_7 : f32 to vector<16x128xf32>
    %12 = arith.mulf %8, %11 : vector<16x128xf32>
    %13 = math.erf %12 : vector<16x128xf32>
    %cst_8 = arith.constant 1.000000e+00 : f32
    %14 = vector.broadcast %cst_8 : f32 to vector<16x128xf32>
    %15 = arith.addf %14, %13 : vector<16x128xf32>
    %16 = arith.mulf %10, %15 : vector<16x128xf32>
    %c0_9 = arith.constant 0 : index
    %c0_10 = arith.constant 0 : index
    %17 = vector.load %arg9[%c0_9, %c0_10] : memref<16x128xf32, #tpu.memory_space<vmem>>, vector<16x128xf32>
    %c0_11 = arith.constant 0 : index
    %c0_12 = arith.constant 0 : index
    %18 = vector.load %arg6[%c0_11, %c0_12] : memref<128x128xf32, #tpu.memory_space<vmem>>, vector<128x128xf32>
    %cst_13 = arith.constant dense<0.000000e+00> : vector<16x128xf32>
    %19 = tpu.matmul %16, %18, %cst_13 {dimension_numbers = #tpu.dot_dimension_numbers<[1], [0], [0], [1], [0, 0, 1, 1], [], []>} : vector<16x128xf32>, vector<128x128xf32>, vector<16x128xf32> -> vector<16x128xf32>
    %20 = arith.addf %17, %19 : vector<16x128xf32>
    %c0_14 = arith.constant 0 : index
    %c0_15 = arith.constant 0 : index
    %21 = vector.load %arg9[%c0_14, %c0_15] : memref<16x128xf32, #tpu.memory_space<vmem>>, vector<16x128xf32>
    tpu.vector_store %arg9[%c0_14, %c0_15], %20 {strides = array<i32>} : memref<16x128xf32, #tpu.memory_space<vmem>>, vector<16x128xf32>,
    %c0_i32_16 = arith.constant 0 : i32
    %22 = arith.cmpi eq, %arg2, %c0_i32_16 : i32
    %23 = arith.extui %22 : i1 to i32
    %c0_i32_17 = arith.constant 0 : i32
    %24 = arith.cmpi ne, %23, %c0_i32_17 : i32
    scf.if %24 {
      %c0_18 = arith.constant 0 : index
      %c0_19 = arith.constant 0 : index
      %25 = vector.load %arg9[%c0_18, %c0_19] : memref<16x128xf32, #tpu.memory_space<vmem>>, vector<16x128xf32>
      %c0_20 = arith.constant 0 : index
      %c0_21 = arith.constant 0 : index
      %26 = vector.load %arg7[%c0_20, %c0_21] : memref<1x128xf32, #tpu.memory_space<vmem>>, vector<1x128xf32>
      %27 = vector.broadcast %26 : vector<1x128xf32> to vector<16x128xf32>
      %28 = arith.addf %25, %27 : vector<16x128xf32>
      %c0_22 = arith.constant 0 : index
      %c0_23 = arith.constant 0 : index
      %29 = vector.load %arg8[%c0_22, %c0_23] : memref<16x128xf32, #tpu.memory_space<vmem>>, vector<16x128xf32>
      tpu.vector_store %arg8[%c0_22, %c0_23], %28 {strides = array<i32>} : memref<16x128xf32, #tpu.memory_space<vmem>>, vector<16x128xf32>,
    } else {
    }
    return
  }
  func.func @transform_0(%arg0: i32, %arg1: i32, %arg2: i32) -> (i32, i32) {
    %c0_i32 = arith.constant 0 : i32
    %c0_i32_0 = arith.constant 0 : i32
    return %arg0, %c0_i32 : i32, i32
  }
  func.func @transform_1(%arg0: i32, %arg1: i32, %arg2: i32) -> (i32, i32) {
    %c0_i32 = arith.constant 0 : i32
    %c0_i32_0 = arith.constant 0 : i32
    return %c0_i32, %arg2 : i32, i32
  }
  func.func @transform_2(%arg0: i32, %arg1: i32, %arg2: i32) -> (i32, i32) {
    %c0_i32 = arith.constant 0 : i32
    %c0_i32_0 = arith.constant 0 : i32
    return %c0_i32, %arg2 : i32, i32
  }
  func.func @transform_3(%arg0: i32, %arg1: i32, %arg2: i32) -> (i32, i32) {
    %c0_i32 = arith.constant 0 : i32
    return %arg2, %arg1 : i32, i32
  }
  func.func @transform_4(%arg0: i32, %arg1: i32, %arg2: i32) -> (i32, i32) {
    %c0_i32 = arith.constant 0 : i32
    %c0_i32_0 = arith.constant 0 : i32
    return %c0_i32, %arg1 : i32, i32
  }
  func.func @transform_5(%arg0: i32, %arg1: i32, %arg2: i32) -> (i32, i32) {
    %c0_i32 = arith.constant 0 : i32
    return %arg0, %arg1 : i32, i32
  }
}

</mosaic_0001>

<bundles_post_ra>
// kernel: tpu_custom_call.1
= control target key start
LH: loop header
LB: loop body
LE: loop exit
PB: predicated region body
PF: predicated region fallthrough
CT: control target
= control target key end

     0   :  { %10 = vsyncpa [#allocation4], 0  ;;  %s579_s0 = inlined_call_operand.hbm [shape: f32[16,128], index: 0, kind: input, shape index: {}]   ;;  %s580_s1 = inlined_call_operand.hbm [shape: f32[128,128], index: 1, kind: input, shape index: {}]   ;;  %s581_s2 = inlined_call_operand.vmem [shape: f32[1,128], index: 2, kind: input, shape index: {}]   ;;  %s582_s3 = inlined_call_operand.hbm [shape: f32[128,128], index: 3, kind: input, shape index: {}]   ;;  %s583_s4 = inlined_call_operand.vmem [shape: f32[1,128], index: 4, kind: input, shape index: {}]   ;;  %s584_s5 = inlined_call_operand.hbm [shape: f32[16,128], index: 5, kind: output, shape index: {}]  }
   0x1   :  { %11 = vsyncpa [#allocation7], 0 }
   0x2   :  { %12 = vsyncpa [#allocation5], 0  ;;  %s513_s18 = smov [#allocation6]   ;;  %s514_s20 = smov [#allocation3]  }
   0x3   :  { %s30_s19 = sshll.u32 %s513_s18, 4  ;;  %s18_s21 = sshll.u32 %s514_s20, 4  ;;  %s31_s19 = int_to_ptr.vmem [resolvable:$true] %s30_s19  ;;  %s19_s21 = int_to_ptr.vmem [resolvable:$true] %s18_s21 }
   0x4   :  { %s435_s22 = scalar_lea.vmem %s31_s19, 2048  ;;  %p440_p1 = scmp.lt.s32.totalorder %s31_s19, %s31_s19 }
   0x5   :  { %p436_p0 = scmp.ne.s32.totalorder %s31_s19, %s435_s22  ;;  %p441_p2 = scmp.lt.s32.totalorder %s435_s22, %s435_s22 }
   0x7   :  { %p442_p3 = por %p441_p2, %p440_p1 }
   0x9   :  { %p443_p4 = pnand %p442_p3, %p436_p0 }
   0xb   :  { %446 = shalt.err (!%p443_p4)
}
   0xc   :  { %s515_s23 = smov 128   ;;  %s516_s24 = smov 8  }
   0xd   :  { %36 = dma.hbm_to_vmem [thread:$0]  %s580_s1, 2048, %s31_s19, [#allocation7], %s515_s23, %s515_s23, %s516_s24  }
   0xe   :  { %s455_s27 = scalar_lea.vmem %s19_s21, 256  ;;  %p460_p6 = scmp.lt.s32.totalorder %s19_s21, %s19_s21 }
   0xf   :  { %p456_p5 = scmp.ne.s32.totalorder %s19_s21, %s455_s27  ;;  %p461_p7 = scmp.lt.s32.totalorder %s455_s27, %s455_s27 }
  0x11   :  { %p462_p8 = por %p461_p7, %p460_p6 }
  0x13   :  { %p463_p9 = pnand %p462_p8, %p456_p5 }
  0x15   :  { %466 = shalt.err (!%p463_p9)
}
  0x16   :  { %24 = dma.hbm_to_vmem [thread:$0]  %s579_s0, 256, %s19_s21, [#allocation4], %s515_s23, %s515_s23, %s516_s24  }
  0x17   :  { %s517_s30 = smov [#allocation8]  }
  0x18   :  { %s44_s6 = sshll.u32 %s517_s30, 4  ;;  %s45_s6 = int_to_ptr.vmem [resolvable:$true] %s44_s6 }
  0x19   :  { %s475_s7 = scalar_lea.vmem %s45_s6, 2048  ;;  %p480_p11 = scmp.lt.s32.totalorder %s45_s6, %s45_s6 }
  0x1a   :  { %p476_p10 = scmp.ne.s32.totalorder %s45_s6, %s475_s7  ;;  %p481_p12 = scmp.lt.s32.totalorder %s475_s7, %s475_s7 }
  0x1c   :  { %p482_p13 = por %p481_p12, %p480_p11 }
  0x1e   :  { %p483_p0 = pnand %p482_p13, %p476_p10 }
  0x20   :  { %486 = shalt.err (!%p483_p0)
}
  0x21   :  { %50 = dma.hbm_to_vmem [thread:$0]  %s582_s3, 2048, %s45_s6, [#allocation7], %s515_s23, %s515_s23, %s516_s24  }
  0x22   :  { %507 = dma.done.wait [#allocation4], 256  }
  0x23   :  { %508 = vsyncadd [#allocation4], 4294967040 }
  0x24   :  { %509 = dma.done.wait [#allocation7], 4096  }
  0x25   :  { %510 = vsyncadd [#allocation7], 4294963200  ;;  %v86_v0 = vld [vmem:[#allocation6 + $0x78] sm:$0xff]  ;;  %v85_v1 = vld [vmem:[#allocation6 + $0x70] sm:$0xff]  ;;  %s518_s10 = smov [#allocation9]  }
  0x26   :  { %347 = vmatprep.subr.mxu0 %v86_v0  ;;  %v84_v2 = vld [vmem:[#allocation6 + $0x68] sm:$0xff]  ;;  %v83_v3 = vld [vmem:[#allocation6 + $0x60] sm:$0xff]  ;;  %v69_v4 = vld [vmem:[#allocation3] sm:$0xff]  ;;  %s296_s11 = sshll.u32 %s518_s10, 4  ;;  %s297_s11 = int_to_ptr.vmem [resolvable:$true] %s296_s11 }
  0x27   :  { %348 = vmatpush3.msra.mxu0 %v86_v0  ;;  %v82_v5 = vld [vmem:[#allocation6 + $0x58] sm:$0xff]  ;;  %379 = vmatprep.mubr.f32.mxu0 %v69_v4  ;;  %v194_v7 = vld [vmem:[#allocation8 + $0x70] sm:$0xff]  ;;  %v193_v9 = vld [vmem:[#allocation8 + $0x68] sm:$0xff]  ;;  %s487_s12 = scalar_lea.vmem %s297_s11, 256  ;;  %p492_p2 = scmp.lt.s32.totalorder %s297_s11, %s297_s11 }
  0x28   :  { %349 = vmatprep.subr.mxu0 %v85_v1  ;;  %v195_v6 = vld [vmem:[#allocation8 + $0x78] sm:$0xff]  ;;  %v81_v8 = vld [vmem:[#allocation6 + $0x50] sm:$0xff]  ;;  %v80_v10 = vld [vmem:[#allocation6 + $0x48] sm:$0xff]  ;;  %p488_p1 = scmp.ne.s32.totalorder %s297_s11, %s487_s12  ;;  %p493_p3 = scmp.lt.s32.totalorder %s487_s12, %s487_s12 }
  0x29   :  { %350 = vmatpush3.msra.mxu0 %v85_v1  ;;  %382 = vmatprep.subr.mxu1 %v195_v6  ;;  %v79_v11 = vld [vmem:[#allocation6 + $0x40] sm:$0xff]  ;;  %v78_v12 = vld [vmem:[#allocation6 + $0x38] sm:$0xff]  ;;  %v77_v13 = vld [vmem:[#allocation6 + $0x30] sm:$0xff] }
  0x2a   :  { %351 = vmatprep.subr.mxu0 %v84_v2  ;;  %383 = vmatpush3.msra.mxu1 %v195_v6  ;;  %v76_v14 = vld [vmem:[#allocation6 + $0x28] sm:$0xff]  ;;  %v75_v15 = vld [vmem:[#allocation6 + $0x20] sm:$0xff]  ;;  %v74_v16 = vld [vmem:[#allocation6 + $0x18] sm:$0xff]  ;;  %p494_p4 = por %p493_p3, %p492_p2 }
  0x2b   :  { %352 = vmatpush3.msra.mxu0 %v84_v2  ;;  %384 = vmatprep.subr.mxu1 %v194_v7  ;;  %v73_v17 = vld [vmem:[#allocation6 + $0x10] sm:$0xff]  ;;  %v72_v18 = vld [vmem:[#allocation6 + $0x8] sm:$0xff]  ;;  %v71_v19 = vld [vmem:[#allocation6] sm:$0xff] }
  0x2c   :  { %353 = vmatprep.subr.mxu0 %v83_v3  ;;  %385 = vmatpush3.msra.mxu1 %v194_v7  ;;  %v70_v20 = vld [vmem:[#allocation3 + $0x8] sm:$0xff]  ;;  %v192_v21 = vld [vmem:[#allocation8 + $0x60] sm:$0xff]  ;;  %v190_v23 = vld [vmem:[#allocation8 + $0x50] sm:$0xff]  ;;  %p495_p5 = pnand %p494_p4, %p488_p1 }
  0x2d   :  { %354 = vmatpush3.msra.mxu0 %v83_v3  ;;  %386 = vmatprep.subr.mxu1 %v193_v9  ;;  %v191_v22 = vld [vmem:[#allocation8 + $0x58] sm:$0xff]  ;;  %v189_v24 = vld [vmem:[#allocation8 + $0x48] sm:$0xff]  ;;  %v188_v25 = vld [vmem:[#allocation8 + $0x40] sm:$0xff] }
  0x2e   :  { %355 = vmatprep.subr.mxu0 %v82_v5  ;;  %387 = vmatpush3.msra.mxu1 %v193_v9  ;;  %v187_v26 = vld [vmem:[#allocation8 + $0x38] sm:$0xff]  ;;  %v186_v27 = vld [vmem:[#allocation8 + $0x30] sm:$0xff]  ;;  %v185_v28 = vld [vmem:[#allocation8 + $0x28] sm:$0xff] }
  0x2f   :  { %356 = vmatpush3.msra.mxu0 %v82_v5  ;;  %388 = vmatprep.subr.mxu1 %v192_v21  ;;  %v184_v29 = vld [vmem:[#allocation8 + $0x20] sm:$0xff]  ;;  %v183_v30 = vld [vmem:[#allocation8 + $0x18] sm:$0xff]  ;;  %v182_v31 = vld [vmem:[#allocation8 + $0x10] sm:$0xff] }
  0x30   :  { %357 = vmatprep.subr.mxu0 %v81_v8  ;;  %389 = vmatpush3.msra.mxu1 %v192_v21  ;;  %v181_v32 = vld [vmem:[#allocation8 + $0x8] sm:$0xff]  ;;  %v180_v33 = vld [vmem:[#allocation8] sm:$0xff]  ;;  %v309_v34 = vld [vmem:[%s581_s2] ss:$0 sm:$0xff] }
  0x31   :  { %358 = vmatpush3.msra.mxu0 %v81_v8  ;;  %390 = vmatprep.subr.mxu1 %v191_v22  ;;  %v310_v49 = vld [vmem:[%s583_s4] ss:$0 sm:$0xff] }
  0x32   :  { %359 = vmatprep.subr.mxu0 %v80_v10  ;;  %391 = vmatpush3.msra.mxu1 %v191_v22 }
  0x33   :  { %360 = vmatpush3.msra.mxu0 %v80_v10  ;;  %392 = vmatprep.subr.mxu1 %v190_v23 }
  0x34   :  { %361 = vmatprep.subr.mxu0 %v79_v11  ;;  %393 = vmatpush3.msra.mxu1 %v190_v23 }
  0x35   :  { %362 = vmatpush3.msra.mxu0 %v79_v11  ;;  %394 = vmatprep.subr.mxu1 %v189_v24 }
  0x36   :  { %363 = vmatprep.subr.mxu0 %v78_v12  ;;  %395 = vmatpush3.msra.mxu1 %v189_v24 }
  0x37   :  { %364 = vmatpush3.msra.mxu0 %v78_v12  ;;  %396 = vmatprep.subr.mxu1 %v188_v25 }
  0x38   :  { %365 = vmatprep.subr.mxu0 %v77_v13  ;;  %397 = vmatpush3.msra.mxu1 %v188_v25 }
  0x39   :  { %366 = vmatpush3.msra.mxu0 %v77_v13  ;;  %398 = vmatprep.subr.mxu1 %v187_v26 }
  0x3a   :  { %367 = vmatprep.subr.mxu0 %v76_v14  ;;  %399 = vmatpush3.msra.mxu1 %v187_v26 }
  0x3b   :  { %368 = vmatpush3.msra.mxu0 %v76_v14  ;;  %400 = vmatprep.subr.mxu1 %v186_v27 }
  0x3c   :  { %369 = vmatprep.subr.mxu0 %v75_v15  ;;  %401 = vmatpush3.msra.mxu1 %v186_v27 }
  0x3d   :  { %370 = vmatpush3.msra.mxu0 %v75_v15  ;;  %402 = vmatprep.subr.mxu1 %v185_v28 }
  0x3e   :  { %371 = vmatprep.subr.mxu0 %v74_v16  ;;  %403 = vmatpush3.msra.mxu1 %v185_v28 }
  0x3f   :  { %372 = vmatpush3.msra.mxu0 %v74_v16  ;;  %404 = vmatprep.subr.mxu1 %v184_v29 }
  0x40   :  { %373 = vmatprep.subr.mxu0 %v73_v17  ;;  %405 = vmatpush3.msra.mxu1 %v184_v29 }
  0x41   :  { %374 = vmatpush3.msra.mxu0 %v73_v17  ;;  %406 = vmatprep.subr.mxu1 %v183_v30 }
  0x42   :  { %375 = vmatprep.subr.mxu0 %v72_v18  ;;  %407 = vmatpush3.msra.mxu1 %v183_v30 }
  0x43   :  { %376 = vmatpush3.msra.mxu0 %v72_v18  ;;  %408 = vmatprep.subr.mxu1 %v182_v31 }
  0x44   :  { %377 = vmatprep.subr.mxu0 %v71_v19  ;;  %409 = vmatpush3.msra.mxu1 %v182_v31 }
  0x45   :  { %378 = vmatpush3.msra.mxu0 %v71_v19  ;;  %410 = vmatprep.subr.mxu1 %v181_v32 }
  0x46   :  { %380 = vmatmul.mubr.f32.vlgmr.msra.gmra.mxu0 %v70_v20  ;;  %411 = vmatpush3.msra.mxu1 %v181_v32 }
  0x47   :  { %412 = vmatprep.subr.mxu1 %v180_v33 }
  0x48   :  { %413 = vmatpush3.msra.mxu1 %v180_v33 }
 0x106   :  { %v381_v35 = vpop.f32.mrf.mxu0 }
 0x107   :  { %v165_v36 = vadd.f32 %v381_v35, %v309_v34 }
 0x108   :  { %v159_v37 = vpop.f32.mrf.mxu0 }
 0x109   :  { %v171_v38 = vmul.f32 0.70710677, %v165_v36  ;;  %v160_v39 = vadd.f32 %v309_v34, %v159_v37  ;;  %v169_v46 = vmul.f32 0.5, %v165_v36 }
 0x10b   :  { %423 = verf.f32 %v171_v38  ;;  %v170_v40 = vmul.f32 0.70710677, %v160_v39  ;;  %v168_v44 = vmul.f32 0.5, %v160_v39 }
 0x10d   :  { %425 = verf.f32 %v170_v40 }
 0x118   :  { %v424_v41 = vpop.eup %423 }
 0x119   :  { %v175_v43 = vadd.f32 1.0, %v424_v41 }
 0x11a   :  { %v426_v42 = vpop.eup %425 }
 0x11b   :  { %v174_v45 = vadd.f32 1.0, %v426_v42  ;;  %v177_v48 = vmul.f32 %v175_v43, %v169_v46 }
 0x11d   :  { %v176_v47 = vmul.f32 %v174_v45, %v168_v44 }
 0x11f   :  { %414 = vmatprep.mubr.f32.mxu1 %v176_v47 }
 0x120   :  { %415 = vmatmul.mubr.f32.vlgmr.msra.gmra.mxu1 %v177_v48 }
 0x1e0   :  { %v416_v50 = vpop.f32.mrf.mxu1 }
 0x1e1   :  { %v288_v51 = vadd.f32 %v416_v50, %v310_v49 }
 0x1e2   :  { %v262_v52 = vpop.f32.mrf.mxu1 }
 0x1e3   :  { %290 = vst [vmem:[#allocation9 + $0x8] sm:$0xff] %v288_v51  ;;  %v287_v53 = vadd.f32 %v310_v49, %v262_v52 }
 0x1e5   :  { %289 = vst [vmem:[#allocation9] sm:$0xff] %v287_v53 }
 0x1e6   :  { %498 = shalt.err (!%p495_p5)
}
 0x1e7   :  { %302 = dma.vmem_to_hbm [thread:$0]  %s297_s11, 256, %s584_s5, [#allocation5], %s515_s23, %s515_s23, %s516_s24  }
 0x1e8   :  { %511 = dma.done.wait [#allocation5], 256  }
 0x1e9   :  { %512 = vsyncadd [#allocation5], 4294967040 }
 0x1ea   :  { %306 = vsyncpa [#allocation4], 1 }
 0x1eb   :  { %307 = vsyncpa [#allocation7], 1 }
 0x1ec   :  { %308 = vsyncpa [#allocation5], 1 }

</bundles_post_ra>
